<compile_context>
chip_gen: v7x
topology: tpu7x:2x2x1
jax: 0.10.0
libtpu: 0.0.40
codegen_flags: <defaults>
</compile_context>

<pallas_src>
import functools

import jax
import jax.numpy as jnp
from jax import lax
from jax.experimental import pallas as pl
from jax.experimental.pallas import tpu as pltpu


def _round_up(a, m):
    return (a + m - 1) // m * m


def _res_conv1d_kernel(x_ref, hl_ref, hr_ref, pp_ref, w1_ref, w2_ref,
                       o_ref, win_ref, *, dilation, eps, seq_len, mxu_dtype):
    d = dilation
    Bt, C, tT = x_ref.shape

    x = x_ref[...]                                   # (Bt, C, tT) f32, lane-dense load

    # Halo-extended raw window in VMEM scratch: columns [t0-d, t0+tT+d).
    win_ref[:, :, :d] = hl_ref[...][:, 0]            # left halo (prev tile / zeros)
    win_ref[:, :, d:d + tT] = x                      # this tile
    win_ref[:, :, d + tT:] = hr_ref[...][:, 0]       # right halo (next tile / zeros)

    p = pp_ref[...]                                  # (C, 6) packed per-channel params
    g1, b1, c1b = p[:, 0:1][None], p[:, 1:2][None], p[:, 2:3][None]
    g2, b2, c2b = p[:, 3:4][None], p[:, 4:5][None], p[:, 5:6][None]

    def ln_relu(v, g, b):
        # LayerNorm over channels (sublane axis), biased variance like torch, then ReLU.
        m = jnp.mean(v, axis=1, keepdims=True)
        c = v - m
        var = jnp.mean(c * c, axis=1, keepdims=True)
        return jnp.maximum(c * lax.rsqrt(var + eps) * g + b, 0.0)

    hw = ln_relu(win_ref[...], g1, b1)               # (Bt, C, tT + 2d), f32

    # Global output-column index: (1, 1, tT) lane iota broadcast over batch/channels.
    t0 = pl.program_id(1) * tT
    tcol = lax.broadcasted_iota(jnp.int32, (1, 1, tT), 2) + t0

    # conv1 taps h(t-d), h(t), h(t+d); conv zero-padding applies at the TRUE sequence
    # edges only (halo columns from neighbouring tiles are real data).
    h_m = jnp.where(tcol >= d, hw[:, :, :tT], 0.0)
    h_c = hw[:, :, d:d + tT]
    h_p = jnp.where(tcol + d < seq_len, hw[:, :, 2 * d:], 0.0)

    w1 = w1_ref[...]                                 # (3, n_state, n_in) in mxu_dtype

    def bmm(w_oc, v_bct):                            # (O,C) @ (Bt,C,tT) -> (Bt,O,tT), f32 acc
        wb = jnp.broadcast_to(w_oc[None], (Bt,) + w_oc.shape)
        return jnp.einsum("boc,bct->bot", wb, v_bct.astype(mxu_dtype),
                          preferred_element_type=jnp.float32)

    # Conv1d(k=3, dilation=d): three accumulating MXU matmuls (no 3C concat temp).
    y = bmm(w1[0], h_m) + bmm(w1[1], h_c) + bmm(w1[2], h_p) + c1b

    # LayerNorm2 + ReLU, then Conv1d(k=1) == matmul.
    y = ln_relu(y, g2, b2)
    z = bmm(w2_ref[...], y) + c2b

    # Dropout == identity (eval mode); residual add; lane-dense store.
    o_ref[...] = (z + x).astype(o_ref.dtype)


def res_conv1d_block(x_ncl, params, *, dilation=1, eps=1e-5,
                     batch_tile=None, time_tile=None, mxu_dtype=jnp.bfloat16):
    """x_ncl: (B, n_in, T), PyTorch Conv1d layout. Returns the same shape/dtype."""
    B, C, T = x_ncl.shape
    w1 = params["conv1_w"]                           # (n_state, n_in, 3)
    n_state = w1.shape[0]

    assert w1.shape[1] == C, "conv1 in-channels must equal n_in"
    assert n_state == C, (
        "ResConv1DBlock applies LayerNorm(n_in) after conv1, so it requires "
        f"n_state == n_in (got n_state={n_state}, n_in={C})")
    assert dilation >= 1
    d = dilation

    # ---- tile sizes (lane-dense tT, >= ~0.5 MiB activation per block when possible) ----
    if time_tile is None:
        time_tile = min(1024, _round_up(T, 128))
    tT = _round_up(min(time_tile, _round_up(T, 128)), 128)
    assert d < tT, "dilation must be smaller than the time tile"  # TODO(synk): d >= tT halos
    T_pad = _round_up(T, tT)
    nT = T_pad // tT

    if batch_tile is None:
        target_bytes = 512 * 1024
        batch_tile = max(1, target_bytes // max(1, C * tT * 4))
    Bt = max(1, min(batch_tile, B))
    B_pad = _round_up(B, Bt)
    nB = B_pad // Bt

    f32 = jnp.float32
    x = x_ncl.astype(f32)
    if (B_pad, T_pad) != (B, T):
        x = jnp.pad(x, ((0, B_pad - B), (0, 0), (0, T_pad - T)))

    # ---- per-tile halo columns (d columns from each neighbouring tile; zeros at edges) ----
    x4 = x.reshape(B_pad, C, nT, tT)
    zcol = jnp.zeros((B_pad, C, 1, d), f32)
    halo_l = jnp.concatenate([zcol, x4[:, :, :-1, tT - d:]], axis=2)   # (B_pad, C, nT, d)
    halo_r = jnp.concatenate([x4[:, :, 1:, :d], zcol], axis=2)
    halo_l = jnp.transpose(halo_l, (0, 2, 1, 3))                       # (B_pad, nT, C, d)
    halo_r = jnp.transpose(halo_r, (0, 2, 1, 3))

    # ---- weights / packed per-channel params ----
    w1t = jnp.transpose(w1, (2, 0, 1)).astype(mxu_dtype)   # (3, n_state, n_in), tap-major
    w2 = params["conv2_w"][:, :, 0].astype(mxu_dtype)      # (n_in, n_state)
    pp = jnp.stack([params["norm1_w"], params["norm1_b"], params["conv1_b"],
                    params["norm2_w"], params["norm2_b"], params["conv2_b"]],
                   axis=1).astype(f32)                     # (C, 6)

    kernel = functools.partial(_res_conv1d_kernel, dilation=d, eps=eps,
                               seq_len=T, mxu_dtype=mxu_dtype)

    block_bytes = Bt * C * tT * 4
    vmem_limit = int(min(64 * 2 ** 20, max(24 * 2 ** 20, 24 * block_bytes)))

    out = pl.pallas_call(
        kernel,
        out_shape=jax.ShapeDtypeStruct((B_pad, C, T_pad), x_ncl.dtype),
        grid_spec=pltpu.PrefetchScalarGridSpec(
            num_scalar_prefetch=0,
            grid=(nB, nT),
            in_specs=[
                pl.BlockSpec((Bt, C, tT), lambda b, t: (b, 0, t)),        # x (NCL)
                pl.BlockSpec((Bt, 1, C, d), lambda b, t: (b, t, 0, 0)),   # left halo
                pl.BlockSpec((Bt, 1, C, d), lambda b, t: (b, t, 0, 0)),   # right halo
                pl.BlockSpec((C, 6), lambda b, t: (0, 0)),                # packed params
                pl.BlockSpec((3, n_state, C), lambda b, t: (0, 0, 0)),    # conv1 W
                pl.BlockSpec((C, n_state), lambda b, t: (0, 0)),          # conv2 W
            ],
            out_specs=pl.BlockSpec((Bt, C, tT), lambda b, t: (b, 0, t)),
            scratch_shapes=[pltpu.VMEM((Bt, C, tT + 2 * d), jnp.float32)],
        ),
        compiler_params=pltpu.CompilerParams(
            dimension_semantics=("parallel", "parallel"),
            vmem_limit_bytes=vmem_limit),
    )(x, halo_l, halo_r, pp, w1t, w2)

    if (B_pad, T_pad) != (B, T):
        out = out[:B, :, :T]
    return out


def _reference(x_ncl, params, *, dilation=1, eps=1e-5):
    """Pure-JAX reference mirroring the PyTorch forward (eval mode), full f32."""
    def ln(x_btc, g, b):
        m = jnp.mean(x_btc, axis=-1, keepdims=True)
        v = jnp.mean((x_btc - m) ** 2, axis=-1, keepdims=True)
        return (x_btc - m) * lax.rsqrt(v + eps) * g + b

    x_orig = x_ncl
    h = ln(jnp.transpose(x_ncl, (0, 2, 1)), params["norm1_w"], params["norm1_b"])
    h = jnp.transpose(h, (0, 2, 1))
    h = jnp.maximum(h, 0.0)
    h = lax.conv_general_dilated(
        h, params["conv1_w"], window_strides=(1,),
        padding=[(dilation, dilation)], rhs_dilation=(dilation,),
        dimension_numbers=("NCH", "OIH", "NCH"),
        precision=lax.Precision.HIGHEST,
    ) + params["conv1_b"][None, :, None]
    h = ln(jnp.transpose(h, (0, 2, 1)), params["norm2_w"], params["norm2_b"])
    h = jnp.transpose(h, (0, 2, 1))
    h = jnp.maximum(h, 0.0)
    h = lax.conv_general_dilated(
        h, params["conv2_w"], window_strides=(1,),
        padding=[(0, 0)], dimension_numbers=("NCH", "OIH", "NCH"),
        precision=lax.Precision.HIGHEST,
    ) + params["conv2_b"][None, :, None]
    return h + x_orig


if __name__ == "__main__":
    # Small demo shapes; T deliberately NOT a multiple of the time tile so the
    # pad/halo/mask paths are exercised (grid = (2 batch tiles, 3 time tiles)).
    B, n_in, T = 4, 16, 320
    n_state = n_in
    dilation = 2

    key = jax.random.PRNGKey(0)
    ks = jax.random.split(key, 9)
    params = {
        "norm1_w": 1.0 + 0.05 * jax.random.normal(ks[0], (n_in,), jnp.float32),
        "norm1_b": 0.05 * jax.random.normal(ks[1], (n_in,), jnp.float32),
        "conv1_w": 0.1 * jax.random.normal(ks[2], (n_state, n_in, 3), jnp.float32),
        "conv1_b": 0.05 * jax.random.normal(ks[3], (n_state,), jnp.float32),
        "norm2_w": 1.0 + 0.05 * jax.random.normal(ks[4], (n_state,), jnp.float32),
        "norm2_b": 0.05 * jax.random.normal(ks[5], (n_state,), jnp.float32),
        "conv2_w": 0.1 * jax.random.normal(ks[6], (n_in, n_state, 1), jnp.float32),
        "conv2_b": 0.05 * jax.random.normal(ks[7], (n_in,), jnp.float32),
    }
    x = jax.random.normal(ks[8], (B, n_in, T), jnp.float32)

    ref = _reference(x, params, dilation=dilation)

    # 1) Exact-semantics check: f32 MXU operands, tight tolerance.
    out_f32 = res_conv1d_block(x, params, dilation=dilation,
                               batch_tile=2, time_tile=128,
                               mxu_dtype=jnp.float32)
    out_f32 = jax.block_until_ready(out_f32)
    assert out_f32.shape == (B, n_in, T)
    assert jnp.allclose(out_f32, ref, atol=1e-3, rtol=1e-3), "f32 path mismatch vs reference"

    # 2) Fast path: bf16 MXU operands (f32 accumulation) — looser tolerance for bf16 rounding.
    out_bf16 = res_conv1d_block(x, params, dilation=dilation,
                                batch_tile=2, time_tile=128)
    out_bf16 = jax.block_until_ready(out_bf16)
    assert out_bf16.shape == (B, n_in, T)
    assert jnp.allclose(out_bf16, ref, atol=1e-1, rtol=1e-1), "bf16 path mismatch vs reference"

    print("KERNEL_OK")
</pallas_src>

<mosaic_0001>
module attributes {stable_mosaic.version = 11 : i64} {
  func.func @_res_conv1d_kernel(%arg0: i32, %arg1: i32, %arg2: memref<2x16x128xf32, #tpu.memory_space<vmem>>, %arg3: memref<2x1x16x2xf32, #tpu.memory_space<vmem>>, %arg4: memref<2x1x16x2xf32, #tpu.memory_space<vmem>>, %arg5: memref<16x6xf32, #tpu.memory_space<vmem>>, %arg6: memref<3x16x16xf32, #tpu.memory_space<vmem>>, %arg7: memref<16x16xf32, #tpu.memory_space<vmem>>, %arg8: memref<2x16x128xf32, #tpu.memory_space<vmem>>, %arg9: memref<2x16x132xf32, #tpu.memory_space<vmem>>) attributes {dimension_semantics = [#tpu.dimension_semantics<parallel>, #tpu.dimension_semantics<parallel>], iteration_bounds = array<i64: 2, 3>, scalar_prefetch = 0 : i64, scratch_operands = 1 : i64, tpu.core_type = #tpu.core_type<tc>, window_params = [{transform_indices = @transform_0, window_bounds = array<i64: 2, 16, 128>}, {transform_indices = @transform_1, window_bounds = array<i64: 2, 1, 16, 2>}, {transform_indices = @transform_2, window_bounds = array<i64: 2, 1, 16, 2>}, {pipeline_mode = #tpu.pipeline_mode<synchronous>, transform_indices = @transform_3, window_bounds = array<i64: 16, 6>}, {pipeline_mode = #tpu.pipeline_mode<synchronous>, transform_indices = @transform_4, window_bounds = array<i64: 3, 16, 16>}, {pipeline_mode = #tpu.pipeline_mode<synchronous>, transform_indices = @transform_5, window_bounds = array<i64: 16, 16>}, {transform_indices = @transform_6, window_bounds = array<i64: 2, 16, 128>}]} {
    %c0 = arith.constant 0 : index
    %c0_0 = arith.constant 0 : index
    %c0_1 = arith.constant 0 : index
    %0 = vector.load %arg2[%c0, %c0_0, %c0_1] : memref<2x16x128xf32, #tpu.memory_space<vmem>>, vector<2x16x128xf32>
    %c0_2 = arith.constant 0 : index
    %c0_3 = arith.constant 0 : index
    %c0_4 = arith.constant 0 : index
    %c0_5 = arith.constant 0 : index
    %1 = vector.load %arg3[%c0_2, %c0_3, %c0_4, %c0_5] : memref<2x1x16x2xf32, #tpu.memory_space<vmem>>, vector<2x1x16x2xf32>
    %2 = vector.shape_cast %1 : vector<2x1x16x2xf32> to vector<2x16x2xf32>
    %c0_6 = arith.constant 0 : index
    %c0_7 = arith.constant 0 : index
    %c0_8 = arith.constant 0 : index
    %3 = vector.load %arg9[%c0_6, %c0_7, %c0_8] : memref<2x16x132xf32, #tpu.memory_space<vmem>>, vector<2x16x2xf32>
    tpu.vector_store %arg9[%c0_6, %c0_7, %c0_8], %2 {strides = array<i32>} : memref<2x16x132xf32, #tpu.memory_space<vmem>>, vector<2x16x2xf32>,
    %c0_9 = arith.constant 0 : index
    %c0_10 = arith.constant 0 : index
    %c2 = arith.constant 2 : index
    %4 = vector.load %arg9[%c0_9, %c0_10, %c2] : memref<2x16x132xf32, #tpu.memory_space<vmem>>, vector<2x16x128xf32>
    tpu.vector_store %arg9[%c0_9, %c0_10, %c2], %0 {strides = array<i32>} : memref<2x16x132xf32, #tpu.memory_space<vmem>>, vector<2x16x128xf32>,
    %c0_11 = arith.constant 0 : index
    %c0_12 = arith.constant 0 : index
    %c0_13 = arith.constant 0 : index
    %c0_14 = arith.constant 0 : index
    %5 = vector.load %arg4[%c0_11, %c0_12, %c0_13, %c0_14] : memref<2x1x16x2xf32, #tpu.memory_space<vmem>>, vector<2x1x16x2xf32>
    %6 = vector.shape_cast %5 : vector<2x1x16x2xf32> to vector<2x16x2xf32>
    %c0_15 = arith.constant 0 : index
    %c0_16 = arith.constant 0 : index
    %c130 = arith.constant 130 : index
    %7 = vector.load %arg9[%c0_15, %c0_16, %c130] : memref<2x16x132xf32, #tpu.memory_space<vmem>>, vector<2x16x2xf32>
    tpu.vector_store %arg9[%c0_15, %c0_16, %c130], %6 {strides = array<i32>} : memref<2x16x132xf32, #tpu.memory_space<vmem>>, vector<2x16x2xf32>,
    %c0_17 = arith.constant 0 : index
    %c0_18 = arith.constant 0 : index
    %8 = vector.load %arg5[%c0_17, %c0_18] : memref<16x6xf32, #tpu.memory_space<vmem>>, vector<16x6xf32>
    %9 = vector.extract_strided_slice %8 {offsets = [0, 0], sizes = [16, 1], strides = [1, 1]} : vector<16x6xf32> to vector<16x1xf32>
    %10 = vector.shape_cast %9 : vector<16x1xf32> to vector<1x16x1xf32>
    %11 = vector.extract_strided_slice %8 {offsets = [0, 1], sizes = [16, 1], strides = [1, 1]} : vector<16x6xf32> to vector<16x1xf32>
    %12 = vector.shape_cast %11 : vector<16x1xf32> to vector<1x16x1xf32>
    %13 = vector.extract_strided_slice %8 {offsets = [0, 2], sizes = [16, 1], strides = [1, 1]} : vector<16x6xf32> to vector<16x1xf32>
    %14 = vector.shape_cast %13 : vector<16x1xf32> to vector<1x16x1xf32>
    %15 = vector.extract_strided_slice %8 {offsets = [0, 3], sizes = [16, 1], strides = [1, 1]} : vector<16x6xf32> to vector<16x1xf32>
    %16 = vector.shape_cast %15 : vector<16x1xf32> to vector<1x16x1xf32>
    %17 = vector.extract_strided_slice %8 {offsets = [0, 4], sizes = [16, 1], strides = [1, 1]} : vector<16x6xf32> to vector<16x1xf32>
    %18 = vector.shape_cast %17 : vector<16x1xf32> to vector<1x16x1xf32>
    %19 = vector.extract_strided_slice %8 {offsets = [0, 5], sizes = [16, 1], strides = [1, 1]} : vector<16x6xf32> to vector<16x1xf32>
    %20 = vector.shape_cast %19 : vector<16x1xf32> to vector<1x16x1xf32>
    %c0_19 = arith.constant 0 : index
    %c0_20 = arith.constant 0 : index
    %c0_21 = arith.constant 0 : index
    %21 = vector.load %arg9[%c0_19, %c0_20, %c0_21] : memref<2x16x132xf32, #tpu.memory_space<vmem>>, vector<2x16x132xf32>
    %cst = arith.constant dense<0.000000e+00> : vector<2x132xf32>
    %22 = vector.multi_reduction <add>, %21, %cst [1] : vector<2x16x132xf32> to vector<2x132xf32>
    %23 = vector.shape_cast %22 : vector<2x132xf32> to vector<2x1x132xf32>
    %cst_22 = arith.constant 1.600000e+01 : f32
    %24 = vector.broadcast %cst_22 : f32 to vector<2x1x132xf32>
    %25 = arith.divf %23, %24 : vector<2x1x132xf32>
    %26 = vector.broadcast %25 : vector<2x1x132xf32> to vector<2x16x132xf32>
    %27 = arith.subf %21, %26 : vector<2x16x132xf32>
    %28 = arith.mulf %27, %27 : vector<2x16x132xf32>
    %cst_23 = arith.constant dense<0.000000e+00> : vector<2x132xf32>
    %29 = vector.multi_reduction <add>, %28, %cst_23 [1] : vector<2x16x132xf32> to vector<2x132xf32>
    %30 = vector.shape_cast %29 : vector<2x132xf32> to vector<2x1x132xf32>
    %cst_24 = arith.constant 1.600000e+01 : f32
    %31 = vector.broadcast %cst_24 : f32 to vector<2x1x132xf32>
    %32 = arith.divf %30, %31 : vector<2x1x132xf32>
    %cst_25 = arith.constant 9.99999974E-6 : f32
    %33 = vector.broadcast %cst_25 : f32 to vector<2x1x132xf32>
    %34 = arith.addf %32, %33 : vector<2x1x132xf32>
    %35 = math.rsqrt %34 : vector<2x1x132xf32>
    %36 = vector.broadcast %35 : vector<2x1x132xf32> to vector<2x16x132xf32>
    %37 = arith.mulf %27, %36 : vector<2x16x132xf32>
    %38 = vector.broadcast %10 : vector<1x16x1xf32> to vector<2x16x132xf32>
    %39 = arith.mulf %37, %38 : vector<2x16x132xf32>
    %40 = vector.broadcast %12 : vector<1x16x1xf32> to vector<2x16x132xf32>
    %41 = arith.addf %39, %40 : vector<2x16x132xf32>
    %cst_26 = arith.constant 0.000000e+00 : f32
    %42 = vector.broadcast %cst_26 : f32 to vector<2x16x132xf32>
    %43 = arith.maximumf %41, %42 : vector<2x16x132xf32>
    %c128_i32 = arith.constant 128 : i32
    %44 = arith.muli %arg1, %c128_i32 : i32
    %45 = tpu.iota {dimensions = array<i32: 2>} : vector<1x1x128xi32>
    %46 = vector.broadcast %44 : i32 to vector<1x1x128xi32>
    %47 = arith.addi %45, %46 : vector<1x1x128xi32>
    %c2_i32 = arith.constant 2 : i32
    %48 = vector.broadcast %c2_i32 : i32 to vector<1x1x128xi32>
    %49 = arith.cmpi sge, %47, %48 : vector<1x1x128xi32>
    %50 = vector.extract_strided_slice %43 {offsets = [0, 0, 0], sizes = [2, 16, 128], strides = [1, 1, 1]} : vector<2x16x132xf32> to vector<2x16x128xf32>
    %cst_27 = arith.constant 0.000000e+00 : f32
    %51 = vector.shape_cast %49 : vector<1x1x128xi1> to vector<1x1x128xi1>
    %52 = vector.broadcast %51 : vector<1x1x128xi1> to vector<2x16x128xi1>
    %53 = vector.broadcast %cst_27 : f32 to vector<2x16x128xf32>
    %54 = arith.select %52, %50, %53 : vector<2x16x128xi1>, vector<2x16x128xf32>
    %55 = vector.extract_strided_slice %43 {offsets = [0, 0, 2], sizes = [2, 16, 128], strides = [1, 1, 1]} : vector<2x16x132xf32> to vector<2x16x128xf32>
    %c2_i32_28 = arith.constant 2 : i32
    %56 = vector.broadcast %c2_i32_28 : i32 to vector<1x1x128xi32>
    %57 = arith.addi %47, %56 : vector<1x1x128xi32>
    %c320_i32 = arith.constant 320 : i32
    %58 = vector.broadcast %c320_i32 : i32 to vector<1x1x128xi32>
    %59 = arith.cmpi slt, %57, %58 : vector<1x1x128xi32>
    %60 = vector.extract_strided_slice %43 {offsets = [0, 0, 4], sizes = [2, 16, 128], strides = [1, 1, 1]} : vector<2x16x132xf32> to vector<2x16x128xf32>
    %cst_29 = arith.constant 0.000000e+00 : f32
    %61 = vector.shape_cast %59 : vector<1x1x128xi1> to vector<1x1x128xi1>
    %62 = vector.broadcast %61 : vector<1x1x128xi1> to vector<2x16x128xi1>
    %63 = vector.broadcast %cst_29 : f32 to vector<2x16x128xf32>
    %64 = arith.select %62, %60, %63 : vector<2x16x128xi1>, vector<2x16x128xf32>
    %c0_30 = arith.constant 0 : index
    %c0_31 = arith.constant 0 : index
    %c0_32 = arith.constant 0 : index
    %65 = vector.load %arg6[%c0_30, %c0_31, %c0_32] : memref<3x16x16xf32, #tpu.memory_space<vmem>>, vector<3x16x16xf32>
    %66 = vector.extract_strided_slice %65 {offsets = [0, 0, 0], sizes = [1, 16, 16], strides = [1, 1, 1]} : vector<3x16x16xf32> to vector<1x16x16xf32>
    %67 = vector.shape_cast %66 : vector<1x16x16xf32> to vector<16x16xf32>
    %68 = vector.shape_cast %67 : vector<16x16xf32> to vector<1x16x16xf32>
    %69 = vector.shape_cast %68 : vector<1x16x16xf32> to vector<1x16x16xf32>
    %70 = vector.broadcast %69 : vector<1x16x16xf32> to vector<2x16x16xf32>
    "tpu.trace_start"() <{level = 10 : i32, message = "boc,bct->bot"}> : () -> ()
    %cst_33 = arith.constant dense<0.000000e+00> : vector<2x16x128xf32>
    %71 = tpu.matmul %70, %54, %cst_33 {dimension_numbers = #tpu.dot_dimension_numbers<[2], [1], [1], [2], [0, 0, 0, 1, 1, 2], [0], [0]>} : vector<2x16x16xf32>, vector<2x16x128xf32>, vector<2x16x128xf32> -> vector<2x16x128xf32>
    "tpu.trace_stop"() : () -> ()
    %72 = vector.extract_strided_slice %65 {offsets = [1, 0, 0], sizes = [1, 16, 16], strides = [1, 1, 1]} : vector<3x16x16xf32> to vector<1x16x16xf32>
    %73 = vector.shape_cast %72 : vector<1x16x16xf32> to vector<16x16xf32>
    %74 = vector.shape_cast %73 : vector<16x16xf32> to vector<1x16x16xf32>
    %75 = vector.shape_cast %74 : vector<1x16x16xf32> to vector<1x16x16xf32>
    %76 = vector.broadcast %75 : vector<1x16x16xf32> to vector<2x16x16xf32>
    "tpu.trace_start"() <{level = 10 : i32, message = "boc,bct->bot"}> : () -> ()
    %cst_34 = arith.constant dense<0.000000e+00> : vector<2x16x128xf32>
    %77 = tpu.matmul %76, %55, %cst_34 {dimension_numbers = #tpu.dot_dimension_numbers<[2], [1], [1], [2], [0, 0, 0, 1, 1, 2], [0], [0]>} : vector<2x16x16xf32>, vector<2x16x128xf32>, vector<2x16x128xf32> -> vector<2x16x128xf32>
    "tpu.trace_stop"() : () -> ()
    %78 = arith.addf %71, %77 : vector<2x16x128xf32>
    %79 = vector.extract_strided_slice %65 {offsets = [2, 0, 0], sizes = [1, 16, 16], strides = [1, 1, 1]} : vector<3x16x16xf32> to vector<1x16x16xf32>
    %80 = vector.shape_cast %79 : vector<1x16x16xf32> to vector<16x16xf32>
    %81 = vector.shape_cast %80 : vector<16x16xf32> to vector<1x16x16xf32>
    %82 = vector.shape_cast %81 : vector<1x16x16xf32> to vector<1x16x16xf32>
    %83 = vector.broadcast %82 : vector<1x16x16xf32> to vector<2x16x16xf32>
    "tpu.trace_start"() <{level = 10 : i32, message = "boc,bct->bot"}> : () -> ()
    %cst_35 = arith.constant dense<0.000000e+00> : vector<2x16x128xf32>
    %84 = tpu.matmul %83, %64, %cst_35 {dimension_numbers = #tpu.dot_dimension_numbers<[2], [1], [1], [2], [0, 0, 0, 1, 1, 2], [0], [0]>} : vector<2x16x16xf32>, vector<2x16x128xf32>, vector<2x16x128xf32> -> vector<2x16x128xf32>
    "tpu.trace_stop"() : () -> ()
    %85 = arith.addf %78, %84 : vector<2x16x128xf32>
    %86 = vector.broadcast %14 : vector<1x16x1xf32> to vector<2x16x128xf32>
    %87 = arith.addf %85, %86 : vector<2x16x128xf32>
    %cst_36 = arith.constant dense<0.000000e+00> : vector<2x128xf32>
    %88 = vector.multi_reduction <add>, %87, %cst_36 [1] : vector<2x16x128xf32> to vector<2x128xf32>
    %89 = vector.shape_cast %88 : vector<2x128xf32> to vector<2x1x128xf32>
    %cst_37 = arith.constant 1.600000e+01 : f32
    %90 = vector.broadcast %cst_37 : f32 to vector<2x1x128xf32>
    %91 = arith.divf %89, %90 : vector<2x1x128xf32>
    %92 = vector.broadcast %91 : vector<2x1x128xf32> to vector<2x16x128xf32>
    %93 = arith.subf %87, %92 : vector<2x16x128xf32>
    %94 = arith.mulf %93, %93 : vector<2x16x128xf32>
    %cst_38 = arith.constant dense<0.000000e+00> : vector<2x128xf32>
    %95 = vector.multi_reduction <add>, %94, %cst_38 [1] : vector<2x16x128xf32> to vector<2x128xf32>
    %96 = vector.shape_cast %95 : vector<2x128xf32> to vector<2x1x128xf32>
    %cst_39 = arith.constant 1.600000e+01 : f32
    %97 = vector.broadcast %cst_39 : f32 to vector<2x1x128xf32>
    %98 = arith.divf %96, %97 : vector<2x1x128xf32>
    %cst_40 = arith.constant 9.99999974E-6 : f32
    %99 = vector.broadcast %cst_40 : f32 to vector<2x1x128xf32>
    %100 = arith.addf %98, %99 : vector<2x1x128xf32>
    %101 = math.rsqrt %100 : vector<2x1x128xf32>
    %102 = vector.broadcast %101 : vector<2x1x128xf32> to vector<2x16x128xf32>
    %103 = arith.mulf %93, %102 : vector<2x16x128xf32>
    %104 = vector.broadcast %16 : vector<1x16x1xf32> to vector<2x16x128xf32>
    %105 = arith.mulf %103, %104 : vector<2x16x128xf32>
    %106 = vector.broadcast %18 : vector<1x16x1xf32> to vector<2x16x128xf32>
    %107 = arith.addf %105, %106 : vector<2x16x128xf32>
    %cst_41 = arith.constant 0.000000e+00 : f32
    %108 = vector.broadcast %cst_41 : f32 to vector<2x16x128xf32>
    %109 = arith.maximumf %107, %108 : vector<2x16x128xf32>
    %c0_42 = arith.constant 0 : index
    %c0_43 = arith.constant 0 : index
    %110 = vector.load %arg7[%c0_42, %c0_43] : memref<16x16xf32, #tpu.memory_space<vmem>>, vector<16x16xf32>
    %111 = vector.shape_cast %110 : vector<16x16xf32> to vector<1x16x16xf32>
    %112 = vector.shape_cast %111 : vector<1x16x16xf32> to vector<1x16x16xf32>
    %113 = vector.broadcast %112 : vector<1x16x16xf32> to vector<2x16x16xf32>
    "tpu.trace_start"() <{level = 10 : i32, message = "boc,bct->bot"}> : () -> ()
    %cst_44 = arith.constant dense<0.000000e+00> : vector<2x16x128xf32>
    %114 = tpu.matmul %113, %109, %cst_44 {dimension_numbers = #tpu.dot_dimension_numbers<[2], [1], [1], [2], [0, 0, 0, 1, 1, 2], [0], [0]>} : vector<2x16x16xf32>, vector<2x16x128xf32>, vector<2x16x128xf32> -> vector<2x16x128xf32>
    "tpu.trace_stop"() : () -> ()
    %115 = vector.broadcast %20 : vector<1x16x1xf32> to vector<2x16x128xf32>
    %116 = arith.addf %114, %115 : vector<2x16x128xf32>
    %117 = arith.addf %116, %0 : vector<2x16x128xf32>
    %c0_45 = arith.constant 0 : index
    %c0_46 = arith.constant 0 : index
    %c0_47 = arith.constant 0 : index
    %118 = vector.load %arg8[%c0_45, %c0_46, %c0_47] : memref<2x16x128xf32, #tpu.memory_space<vmem>>, vector<2x16x128xf32>
    tpu.vector_store %arg8[%c0_45, %c0_46, %c0_47], %117 {strides = array<i32>} : memref<2x16x128xf32, #tpu.memory_space<vmem>>, vector<2x16x128xf32>,
    return
  }
  func.func @transform_0(%arg0: i32, %arg1: i32) -> (i32, i32, i32) {
    %c0_i32 = arith.constant 0 : i32
    %c0_i32_0 = arith.constant 0 : i32
    return %arg0, %c0_i32, %arg1 : i32, i32, i32
  }
  func.func @transform_1(%arg0: i32, %arg1: i32) -> (i32, i32, i32, i32) {
    %c0_i32 = arith.constant 0 : i32
    %c0_i32_0 = arith.constant 0 : i32
    %c0_i32_1 = arith.constant 0 : i32
    return %arg0, %arg1, %c0_i32, %c0_i32_0 : i32, i32, i32, i32
  }
  func.func @transform_2(%arg0: i32, %arg1: i32) -> (i32, i32, i32, i32) {
    %c0_i32 = arith.constant 0 : i32
    %c0_i32_0 = arith.constant 0 : i32
    %c0_i32_1 = arith.constant 0 : i32
    return %arg0, %arg1, %c0_i32, %c0_i32_0 : i32, i32, i32, i32
  }
  func.func @transform_3(%arg0: i32, %arg1: i32) -> (i32, i32) {
    %c0_i32 = arith.constant 0 : i32
    %c0_i32_0 = arith.constant 0 : i32
    %c0_i32_1 = arith.constant 0 : i32
    return %c0_i32, %c0_i32_0 : i32, i32
  }
  func.func @transform_4(%arg0: i32, %arg1: i32) -> (i32, i32, i32) {
    %c0_i32 = arith.constant 0 : i32
    %c0_i32_0 = arith.constant 0 : i32
    %c0_i32_1 = arith.constant 0 : i32
    %c0_i32_2 = arith.constant 0 : i32
    return %c0_i32, %c0_i32_0, %c0_i32_1 : i32, i32, i32
  }
  func.func @transform_5(%arg0: i32, %arg1: i32) -> (i32, i32) {
    %c0_i32 = arith.constant 0 : i32
    %c0_i32_0 = arith.constant 0 : i32
    %c0_i32_1 = arith.constant 0 : i32
    return %c0_i32, %c0_i32_0 : i32, i32
  }
  func.func @transform_6(%arg0: i32, %arg1: i32) -> (i32, i32, i32) {
    %c0_i32 = arith.constant 0 : i32
    %c0_i32_0 = arith.constant 0 : i32
    return %arg0, %c0_i32, %arg1 : i32, i32, i32
  }
}

</mosaic_0001>

<bundles_post_ra>
// kernel: tpu_custom_call.1
= control target key start
LH: loop header
LB: loop body
LE: loop exit
PB: predicated region body
PF: predicated region fallthrough
CT: control target
= control target key end

     0   :  { %s2476_s0 = inlined_call_operand.vmem [shape: f32[4,16,384], index: 0, kind: input, shape index: {}]   ;;  %s2477_s1 = inlined_call_operand.vmem [shape: f32[4,3,16,2], index: 1, kind: input, shape index: {}]   ;;  %s2478_s2 = inlined_call_operand.vmem [shape: f32[4,3,16,2], index: 2, kind: input, shape index: {}]   ;;  %s2479_s3 = inlined_call_operand.vmem [shape: f32[16,6], index: 3, kind: input, shape index: {}]   ;;  %s2480_s4 = inlined_call_operand.vmem [shape: f32[3,16,16], index: 4, kind: input, shape index: {}]   ;;  %s2481_s5 = inlined_call_operand.vmem [shape: f32[16,16], index: 5, kind: input, shape index: {}]   ;;  %s2482_s6 = inlined_call_operand.hbm [shape: f32[4,16,384], index: 6, kind: output, shape index: {}]  }
   0x1   :  { %2483 = sst [smem:[#allocation9_spill]] %s2476_s0 }
   0x2   :  { %11 = vsyncpa [#allocation7], 0 }
   0x3   :  { %13 = vsyncpa [#allocation7 + $0x1], 0  ;;  %s2128_s21 = smov 0   ;;  %s2130_s22 = smov 0  }
   0x4   :  { %s2132_s23 = smov 0   ;;  %s2134_s24 = smov 0  }
   0x5   :  { %s2136_s25 = smov 0   ;;  %s2138_s26 = smov 0  }
   0x6   :  { %s2140_s27 = smov 0   ;;  %s2142_s28 = smov 0  }
   0x7 LB: > { %s1644_s29 = sadd.s32 4294967295, %s2078_s28   ;;  %s1645_s30 = sadd.s32 4294967294, %s2078_s28   ;;  %s2078_s28 = sphi %s2142_s28, %s19_s28   ;;  %s2074_s27 = sphi %s2140_s27, %s2498_s27   ;;  %s2070_s26 = sphi %s2138_s26, %s2497_s26   ;;  %s2066_s25 = sphi %s2136_s25, %s2496_s25   ;;  %s2062_s24 = sphi %s2134_s24, %s2495_s24   ;;  %s2058_s23 = sphi %s2132_s23, %s2494_s23   ;;  %s2054_s22 = sphi %s2130_s22, %s2493_s22   ;;  %s2050_s21 = sphi %s2128_s21, %s2492_s21  }
   0x8   : > { %s28_s7 = sadd.s32 1, %s2070_s26  ;;  %s31_s8 = sadd.s32 1, %s2074_s27 }
   0x9   : > { %p29_p0 = scmp.ge.s32.totalorder %s28_s7, 3  ;;  %p47_p1 = scmp.ne.s32.totalorder %s2058_s23, %s2054_s22 }
   0xa   : > { %p48_p2 = scmp.eq.s32.totalorder %s2078_s28, 0  ;;  %p198_p5 = scmp.eq.s32.totalorder %s1644_s29, 5 }
   0xb   : > { %s2500_s7 = smov (%p29_p0, %s28_s7), 0  ;;  %s2502_s8 = smov (!%p29_p0, %s31_s8), %s2074_s27 }
   0xc   : > { %s36_s9 = ssub.s32 %s2070_s26, %s2500_s7  ;;  %p2180_p3 = por %p48_p2, %p47_p1 }
   0xd   : > { %p33_p4 = scmp.ge.s32.totalorder %s2502_s8, 2  ;;  %p203_p6 = scmp.ne.s32.totalorder %s2054_s22, %s2050_s21 }
   0xe   : > { %p204_p7 = scmp.eq.s32.totalorder %s1645_s30, 5  ;;  %p2188_p8 = por %p198_p5, %p47_p1 }
   0xf   : > { %s2504_s8 = smov (%p33_p4, %s2502_s8), 0  ;;  %s40_s15 = sadd.s32 1, %s2058_s23 }
  0x10   : > { %p2192_p9 = por %p204_p7, %p203_p6  ;;  %s35_s13 = ssub.s32 %s2074_s27, %s2504_s8 }
  0x11   : > { %s37_s14 = sor.u32 %s36_s9, %s35_s13  ;;  %p1647_p11 = scmp.ge.s32.totalorder %s2078_s28, 6 }
  0x12   : > { %p38_p10 = scmp.eq.s32.totalorder %s37_s14, 0 }
  0x13   : > { %229 = sbr.rel (%p1647_p11) target bundleno = 58 (0x3a), region = 28 }
  0x14   : > { %s2200_s16 = scalar_select %p38_p10, %s2058_s23, %s40_s15  }
  0x1a   : > { %232 = sbr.rel (!%p2180_p3) target bundleno = 38 (0x26), region = 32  ;;  %s234_s17 = sand.u32 (%p2180_p3), 1, %s2058_s23  }
  0x1b   : > { %s1834_s18 = smul.u32 (%p2180_p3), 12, %s2074_s27  ;;  %s1648_s19 = sshll.u32 (%p2180_p3), %s234_s17, 5 }
  0x1c   : > { %s2487_s0 = sld [smem:[#allocation9_spill]] (%p2180_p3)  ;;  %s236_s14 = scalar_lea.vmem (%p2180_p3), [#allocation3], %s1648_s19 }
  0x1d   : > { %s239_s20 = sadd.s32 (%p2180_p3), %s2070_s26, %s1834_s18 }
  0x1e   : > { %s1651_s29 = sshll.u32 (%p2180_p3), %s239_s20, 3 }
  0x22   : > { %s241_s13 = scalar_lea.vmem %s2487_s0, %s1651_s29 }
  0x23   : > { %v275_v0 = vld [vmem:[%s241_s13] sm:$0xff]  ;;  %v277_v1 = vld [vmem:[%s241_s13 + $0x18] sm:$0xff]  ;;  %v279_v2 = vld [vmem:[%s241_s13 + $0x30] sm:$0xff] }
  0x24   : > { %276 = vst [vmem:[%s236_s14] sm:$0xff] %v275_v0  ;;  %278 = vst [vmem:[%s236_s14 + $0x8] sm:$0xff] %v277_v1  ;;  %v281_v3 = vld [vmem:[%s241_s13 + $0x48] sm:$0xff] }
  0x25   : > { %280 = vst [vmem:[%s236_s14 + $0x10] sm:$0xff] %v279_v2  ;;  %282 = vst [vmem:[%s236_s14 + $0x18] sm:$0xff] %v281_v3 }
  0x26 PF: > { %288 = sbr.rel (!%p2180_p3) target bundleno = 48 (0x30), region = 70  ;;  %s290_s15 = sand.u32 (%p2180_p3), 1, %s2058_s23  }
  0x27   : > { %s1654_s17 = sshll.u32 (%p2180_p3), %s2070_s26, 1  ;;  %s1652_s18 = sshll.u32 (%p2180_p3), %s290_s15, 5 }
  0x28   : > { %s1835_s20 = smul.u32 (%p2180_p3), 12, %s2074_s27  ;;  %s292_s13 = scalar_lea.vmem (%p2180_p3), [#allocation4], %s1652_s18 }
  0x2a   : > { %s296_s29 = sadd.s32 (%p2180_p3), %s1835_s20, %s1654_s17 }
  0x2b   : > { %s1656_s30 = sshll.u32 (%p2180_p3), %s296_s29, 3 }
  0x2c   : > { %s298_s0 = scalar_lea.vmem (%p2180_p3), %s2477_s1, %s1656_s30 }
  0x2d   : > { %v332_v4 = vld [vmem:[%s298_s0] sm:$0xff]  ;;  %v334_v5 = vld [vmem:[%s298_s0 + $0x8] sm:$0xff]  ;;  %v336_v6 = vld [vmem:[%s298_s0 + $0x30] sm:$0xff] }
  0x2e   : > { %333 = vst [vmem:[%s292_s13] sm:$0xff] %v332_v4  ;;  %335 = vst [vmem:[%s292_s13 + $0x8] sm:$0xff] %v334_v5  ;;  %v338_v7 = vld [vmem:[%s298_s0 + $0x38] sm:$0xff] }
  0x2f   : > { %337 = vst [vmem:[%s292_s13 + $0x10] sm:$0xff] %v336_v6  ;;  %339 = vst [vmem:[%s292_s13 + $0x18] sm:$0xff] %v338_v7 }
  0x30 PF: > { %345 = sbr.rel (!%p2180_p3) target bundleno = 58 (0x3a), region = 108  ;;  %s347_s14 = sand.u32 (%p2180_p3), 1, %s2058_s23  }
  0x31   : > { %s1659_s15 = sshll.u32 (%p2180_p3), %s2070_s26, 1  ;;  %s1657_s17 = sshll.u32 (%p2180_p3), %s347_s14, 5 }
  0x32   : > { %s1836_s20 = smul.u32 (%p2180_p3), 12, %s2074_s27  ;;  %s349_s0 = scalar_lea.vmem (%p2180_p3), [#allocation5], %s1657_s17 }
  0x34   : > { %s353_s29 = sadd.s32 (%p2180_p3), %s1836_s20, %s1659_s15 }
  0x35   : > { %s1661_s30 = sshll.u32 (%p2180_p3), %s353_s29, 3 }
  0x36   : > { %s355_s19 = scalar_lea.vmem (%p2180_p3), %s2478_s2, %s1661_s30 }
  0x37   : > { %v389_v8 = vld [vmem:[%s355_s19] sm:$0xff]  ;;  %v391_v9 = vld [vmem:[%s355_s19 + $0x8] sm:$0xff]  ;;  %v393_v10 = vld [vmem:[%s355_s19 + $0x30] sm:$0xff] }
  0x38   : > { %390 = vst [vmem:[%s349_s0] sm:$0xff] %v389_v8  ;;  %392 = vst [vmem:[%s349_s0 + $0x8] sm:$0xff] %v391_v9  ;;  %v395_v11 = vld [vmem:[%s355_s19 + $0x38] sm:$0xff] }
  0x39   : > { %394 = vst [vmem:[%s349_s0 + $0x10] sm:$0xff] %v393_v10  ;;  %396 = vst [vmem:[%s349_s0 + $0x18] sm:$0xff] %v395_v11 }
  0x3a PF: > { %p1662_p12 = scmp.ge.s32.totalorder %s2078_s28, 1  ;;  %p401_p13 = scmp.lt.s32.totalorder %s2078_s28, 7 }
  0x3c   : > { %p402_p0 = pnand %p1662_p12, %p401_p13 }
  0x3d   : > { %s408_s10 = sand.u32 (!%p402_p0), 1, %s2054_s22   ;;  %v2080_v12 = vmov (!%p402_p0), 0   ;;  %s2081_s15 = smov (!%p402_p0), 2   ;;  %vm471_vm0 = vcmask (!%p402_p0), 15360   ;;  %v2256_v25 = vld [vmem:[%s2479_s3 + $0x8] sm:$0xff] (!%p402_p0)  ;;  %v2261_v26 = vld [vmem:[%s2479_s3] sm:$0xff] (!%p402_p0) }
  0x3e   : > { %405 = sbr.rel (%p402_p0) target bundleno = 917 (0x395), region = 146  ;;  %s2232_s13 = sshll.u32 (!%p402_p0), %s408_s10, 5  ;;  %1922 = vset.pattern.permute.xlu1 (!%p402_p0), %v2080_v12  ;;  %1921 = vset.pattern.permute.xlu0 (!%p402_p0), %v2080_v12  ;;  %v2082_v27 = vmov (!%p402_p0), 1   ;;  %vm492_vm1 = vcmask (!%p402_p0), 1047568   ;;  %vm521_vm2 = vcmask (!%p402_p0), 31760   ;;  %vm543_vm3 = vcmask (!%p402_p0), 31744  }
  0x3f   : > { %s410_s14 = scalar_lea.vmem (!%p402_p0), [#allocation3], %s2232_s13  ;;  %s417_s17 = scalar_lea.vmem (!%p402_p0), [#allocation4], %s2232_s13  ;;  %vm756_vm4 = vcmask (!%p402_p0), 130048   ;;  %vm751_vm5 = vcmask (!%p402_p0), 1031168   ;;  %vm724_vm8 = vcmask (!%p402_p0), 1014784  }
  0x40   : > { %v2235_v13 = vld [vmem:[%s410_s14 + $0x10] sm:$0xff] (!%p402_p0)  ;;  %v2237_v14 = vld [vmem:[%s410_s14] sm:$0xff] (!%p402_p0)  ;;  %v2241_v15 = vld [vmem:[%s410_s14 + $0x18] sm:$0xff] (!%p402_p0)  ;;  %s424_s20 = scalar_lea.vmem (!%p402_p0), [#allocation5], %s2232_s13  ;;  %s1837_s18 = smul.u32 (!%p402_p0), 12, %s2066_s25 }
  0x41   : > { %484 = vrot.lane.b32.xlu1 (!%p402_p0), %v2235_v13, %s2081_s15  ;;  %480 = vrot.lane.b32.xlu0 (!%p402_p0), %v2237_v14, %s2081_s15  ;;  %v2243_v16 = vld [vmem:[%s410_s14 + $0x8] sm:$0xff] (!%p402_p0)  ;;  %v469_v17 = vld [vmem:[%s417_s17 + $0x10] sm:$0xff] (!%p402_p0)  ;;  %s2083_s14 = smov (!%p402_p0), 126   ;;  %s458_s0 = scalar_lea.vmem (!%p402_p0), [#allocation6], %s2232_s13 }
  0x42   : > { %v467_v18 = vld [vmem:[%s417_s17] sm:$0xff] (!%p402_p0)  ;;  %v470_v19 = vld [vmem:[%s417_s17 + $0x18] sm:$0xff] (!%p402_p0)  ;;  %474 = vst.msk [vmem:[#allocation2 + $0x20] sm:$0xff] (!%p402_p0), %vm471_vm0, %v469_v17  ;;  %v468_v20 = vld [vmem:[%s417_s17 + $0x8] sm:$0xff] (!%p402_p0)  ;;  %s1667_s17 = sshll.u32 (!%p402_p0), %s2062_s24, 7  ;;  %s1516_s19 = sadd.s32 (!%p402_p0), %s2062_s24, %s1837_s18 }
  0x43   : > { %472 = vst.msk [vmem:[#allocation2] sm:$0xff] (!%p402_p0), %vm471_vm0, %v467_v18  ;;  %475 = vst.msk [vmem:[#allocation2 + $0x30] sm:$0xff] (!%p402_p0), %vm471_vm0, %v470_v19  ;;  %v502_v21 = vld [vmem:[%s424_s20 + $0x8] sm:$0xff] (!%p402_p0)  ;;  %v501_v22 = vld [vmem:[%s424_s20] sm:$0xff] (!%p402_p0)  ;;  %s2089_s29 = smov (!%p402_p0), [#allocation6]  }
  0x44   : > { %473 = vst.msk [vmem:[#allocation2 + $0x10] sm:$0xff] (!%p402_p0), %vm471_vm0, %v468_v20  ;;  %v504_v23 = vld [vmem:[%s424_s20 + $0x18] sm:$0xff] (!%p402_p0)  ;;  %v503_v24 = vld [vmem:[%s424_s20 + $0x10] sm:$0xff] (!%p402_p0)  ;;  %s1988_s30 = sshll.u32 (!%p402_p0), %s2089_s29, 4  ;;  %s1989_s30 = int_to_ptr.vmem [resolvable:$false] %s1988_s30 }
  0x45   : > { %486 = vrot.lane.b32.xlu1 %v2241_v15, %s2081_s15  ;;  %482 = vrot.lane.b32.xlu0 %v2243_v16, %s2081_s15  ;;  %s1990_s9 = scalar_lea.vmem %s1989_s30, 1024 }
  0x49   : > { %511 = vrot.lane.b32.xlu1 %v502_v21, %s2081_s15  ;;  %509 = vrot.lane.b32.xlu0 %v501_v22, %s2081_s15 }
  0x4d   : > { %515 = vrot.lane.b32.xlu1 %v504_v23, %s2081_s15  ;;  %513 = vrot.lane.b32.xlu0 %v503_v24, %s2081_s15  ;;  %s2084_s15 = smov 124  }
  0x51   : > { %649 = vperm.xlu1 %1922, %v2256_v25   ;;  %644 = vperm.xlu0 %1921, %v2261_v26  }
  0x55   : > { %1923 = vset.pattern.permute.xlu1 %v2082_v27  ;;  %1924 = vset.pattern.permute.xlu0 %v2082_v27 }
  0x56   : > { %661 = vperm.xlu1 %1923, %v2261_v26   ;;  %665 = vperm.xlu0 %1924, %v2256_v25  }
  0xb3   : > { %v485_v28 = vpop.permute.xlu1 %484  ;;  %v481_v29 = vpop.permute.xlu0 %480 }
  0xb4   : > { %497 = vst.msk [vmem:[#allocation2 + $0x20] sm:$0xff] %vm492_vm1, %v485_v28  ;;  %493 = vst.msk [vmem:[#allocation2] sm:$0xff] %vm492_vm1, %v481_v29 }
  0xb5   : > { %498 = vst.msk [vmem:[#allocation2 + $0x28] sm:$0xff] %vm471_vm0, %v485_v28  ;;  %494 = vst.msk [vmem:[#allocation2 + $0x8] sm:$0xff] %vm471_vm0, %v481_v29 }
  0xb7   : > { %v487_v30 = vpop.permute.xlu1 %486  ;;  %v483_v31 = vpop.permute.xlu0 %482 }
  0xb8   : > { %499 = vst.msk [vmem:[#allocation2 + $0x30] sm:$0xff] %vm492_vm1, %v487_v30  ;;  %495 = vst.msk [vmem:[#allocation2 + $0x10] sm:$0xff] %vm492_vm1, %v483_v31 }
  0xb9   : > { %500 = vst.msk [vmem:[#allocation2 + $0x38] sm:$0xff] %vm471_vm0, %v487_v30  ;;  %496 = vst.msk [vmem:[#allocation2 + $0x18] sm:$0xff] %vm471_vm0, %v483_v31 }
  0xbb   : > { %v512_v32 = vpop.permute.xlu1 %511  ;;  %v510_v33 = vpop.permute.xlu0 %509  ;;  %v532_v34 = vld [vmem:[#allocation2 + $0x20] sm:$0xff] }
  0xbc   : > { %523 = vst.msk [vmem:[#allocation2 + $0x18] sm:$0xff] %vm521_vm2, %v512_v32  ;;  %522 = vst.msk [vmem:[#allocation2 + $0x8] sm:$0xff] %vm521_vm2, %v510_v33  ;;  %v528_v38 = vld [vmem:[#allocation2] sm:$0xff] }
  0xbf   : > { %v516_v35 = vpop.permute.xlu1 %515  ;;  %v514_v36 = vpop.permute.xlu0 %513  ;;  %v534_v37 = vld [vmem:[#allocation2 + $0x30] sm:$0xff] }
  0xc0   : > { %v530_v39 = vld [vmem:[#allocation2 + $0x10] sm:$0xff]  ;;  %525 = vst.msk [vmem:[#allocation2 + $0x38] sm:$0xff] %vm521_vm2, %v516_v35  ;;  %524 = vst.msk [vmem:[#allocation2 + $0x28] sm:$0xff] %vm521_vm2, %v514_v36  ;;  %v553_v40 = vadd.f32 %v534_v37, %v532_v34 }
  0xc1   : > { %v536_v41 = vadd.f32 %v530_v39, %v528_v38 }
  0xc2   : > { %v554_v42 = vrot.slane %v553_v40, 4 }
  0xc3   : > { %v537_v43 = vrot.slane %v536_v41, 4  ;;  %v529_v44 = vld [vmem:[#allocation2 + $0x8] sm:$0xff]  ;;  %v531_v45 = vld [vmem:[#allocation2 + $0x18] sm:$0xff] }
  0xc4   : > { %v555_v46 = vadd.f32 %v554_v42, %v553_v40  ;;  %v544_v48 = vsel %vm543_vm3, %v529_v44, 0.0  ;;  %v545_v49 = vsel %vm543_vm3, %v531_v45, 0.0 }
  0xc5   : > { %v538_v47 = vadd.f32 %v537_v43, %v536_v41  ;;  %v546_v50 = vadd.f32 %v545_v49, %v544_v48 }
  0xc6   : > { %v556_v51 = vrot.slane %v555_v46, 2 }
  0xc7   : > { %v539_v52 = vrot.slane %v538_v47, 2  ;;  %v535_v53 = vld [vmem:[#allocation2 + $0x38] sm:$0xff]  ;;  %v533_v54 = vld [vmem:[#allocation2 + $0x28] sm:$0xff]  ;;  %v547_v55 = vrot.slane %v546_v50, 4 }
  0xc8   : > { %v557_v56 = vadd.f32 %v556_v51, %v555_v46  ;;  %v561_v57 = vsel %vm543_vm3, %v535_v53, 0.0  ;;  %v560_v59 = vsel %vm543_vm3, %v533_v54, 0.0 }
  0xc9   : > { %v540_v58 = vadd.f32 %v539_v52, %v538_v47  ;;  %v548_v60 = vadd.f32 %v547_v55, %v546_v50  ;;  %v562_v61 = vadd.f32 %v561_v57, %v560_v59 }
  0xca   : > { %v558_v62 = vrot.slane %v557_v56, 1 }
  0xcb   : > { %v541_v63 = vrot.slane %v540_v58, 1  ;;  %v549_v0 = vrot.slane %v548_v60, 2  ;;  %v563_v1 = vrot.slane %v562_v61, 4 }
  0xcc   : > { %v559_v2 = vadd.f32 %v558_v62, %v557_v56 }
  0xcd   : > { %v542_v3 = vadd.f32 %v541_v63, %v540_v58  ;;  %v550_v4 = vadd.f32 %v549_v0, %v548_v60  ;;  %v564_v5 = vadd.f32 %v563_v1, %v562_v61 }
  0xce   : > { %v572_v6 = vmul.f32 0.0625, %v559_v2 }
  0xcf   : > { %v570_v7 = vmul.f32 0.0625, %v542_v3  ;;  %v551_v8 = vrot.slane %v550_v4, 1  ;;  %v565_v9 = vrot.slane %v564_v5, 2 }
  0xd0   : > { %v2275_v10 = vsub.f32 %v532_v34, %v572_v6  ;;  %v2277_v11 = vsub.f32 %v534_v37, %v572_v6 }
  0xd1   : > { %v2279_v12 = vsub.f32 %v528_v38, %v570_v7  ;;  %v2281_v17 = vsub.f32 %v530_v39, %v570_v7  ;;  %v552_v18 = vadd.f32 %v551_v8, %v550_v4  ;;  %v566_v19 = vadd.f32 %v565_v9, %v564_v5 }
  0xd2   : > { %v586_v20 = vmul.f32 %v2275_v10, %v2275_v10  ;;  %v588_v21 = vmul.f32 %v2277_v11, %v2277_v11 }
  0xd3   : > { %v582_v22 = vmul.f32 %v2279_v12, %v2279_v12  ;;  %v584_v23 = vmul.f32 %v2281_v17, %v2281_v17  ;;  %v567_v24 = vrot.slane %v566_v19, 1  ;;  %v571_v27 = vmul.f32 0.0625, %v552_v18 }
  0xd4   : > { %v606_v28 = vadd.f32 %v588_v21, %v586_v20  ;;  %v650_v20 = vpop.permute.xlu1 %649 }
  0xd5   : > { %v590_v29 = vadd.f32 %v584_v23, %v582_v22  ;;  %v568_v30 = vadd.f32 %v567_v24, %v566_v19  ;;  %v2291_v31 = vsub.f32 %v529_v44, %v571_v27  ;;  %v2293_v32 = vsub.f32 %v531_v45, %v571_v27  ;;  %v645_v22 = vpop.permute.xlu0 %644 }
  0xd6   : > { %v607_v33 = vrot.slane %v606_v28, 4 }
  0xd7   : > { %v591_v34 = vrot.slane %v590_v29, 4  ;;  %v573_v35 = vmul.f32 0.0625, %v568_v30  ;;  %v583_v36 = vmul.f32 %v2291_v31, %v2291_v31  ;;  %v585_v37 = vmul.f32 %v2293_v32, %v2293_v32 }
  0xd8   : > { %v608_v38 = vadd.f32 %v607_v33, %v606_v28 }
  0xd9   : > { %v592_v39 = vadd.f32 %v591_v34, %v590_v29  ;;  %v2299_v40 = vsub.f32 %v533_v54, %v573_v35  ;;  %v2301_v41 = vsub.f32 %v535_v53, %v573_v35  ;;  %v597_v42 = vsel %vm543_vm3, %v583_v36, 0.0  ;;  %v662_v34 = vpop.permute.xlu1 %661  ;;  %v666_v35 = vpop.permute.xlu0 %665 }
  0xda   : > { %v598_v43 = vsel %vm543_vm3, %v585_v37, 0.0  ;;  %v609_v44 = vrot.slane %v608_v38, 2 }
  0xdb   : > { %v593_v45 = vrot.slane %v592_v39, 2  ;;  %v599_v46 = vadd.f32 %v598_v43, %v597_v42  ;;  %v587_v47 = vmul.f32 %v2299_v40, %v2299_v40  ;;  %v589_v48 = vmul.f32 %v2301_v41, %v2301_v41 }
  0xdc   : > { %v610_v49 = vadd.f32 %v609_v44, %v608_v38 }
  0xdd   : > { %v594_v50 = vadd.f32 %v593_v45, %v592_v39  ;;  %v600_v51 = vrot.slane %v599_v46, 4  ;;  %v613_v52 = vsel %vm543_vm3, %v587_v47, 0.0  ;;  %v614_v53 = vsel %vm543_vm3, %v589_v48, 0.0 }
  0xde   : > { %v611_v54 = vrot.slane %v610_v49, 1  ;;  %v615_v57 = vadd.f32 %v614_v53, %v613_v52 }
  0xdf   : > { %v595_v55 = vrot.slane %v594_v50, 1  ;;  %v601_v56 = vadd.f32 %v600_v51, %v599_v46 }
  0xe0   : > { %v612_v58 = vadd.f32 %v611_v54, %v610_v49  ;;  %v616_v61 = vrot.slane %v615_v57, 4 }
  0xe1   : > { %v596_v59 = vadd.f32 %v595_v55, %v594_v50  ;;  %v602_v60 = vrot.slane %v601_v56, 2 }
  0xe2   : > { %v624_v62 = vmul.f32 0.0625, %v612_v58  ;;  %v617_v0 = vadd.f32 %v616_v61, %v615_v57 }
  0xe3   : > { %v603_v63 = vadd.f32 %v602_v60, %v601_v56  ;;  %v622_v1 = vmul.f32 0.0625, %v596_v59 }
  0xe4   : > { %v628_v2 = vadd.f32 1e-05, %v624_v62  ;;  %v618_v4 = vrot.slane %v617_v0, 2 }
  0xe5   : > { %v604_v3 = vrot.slane %v603_v63, 1  ;;  %v626_v5 = vadd.f32 1e-05, %v622_v1 }
  0xe6   : > { %1972 = vrsqrt.f32 %v628_v2  ;;  %v619_v7 = vadd.f32 %v618_v4, %v617_v0  ;;  %v2086_v4 = vmov 3  }
  0xe7   : > { %v605_v6 = vadd.f32 %v604_v3, %v603_v63  ;;  %1974 = vrsqrt.f32 %v626_v5  ;;  %v739_v63 = vld [vmem:[%s2480_s4 + $0x10] sm:$0xff]  ;;  %v2085_v3 = vmov 2   ;;  %v2087_v5 = vmov 4  }
  0xe8   : > { %v620_v8 = vrot.slane %v619_v7, 1  ;;  %1734 = vmatprep.mubr.msk.f32.mxu0 %vm756_vm4, %v739_v63  ;;  %1741 = vmatprep.mubr.msk.f32.mxu1 %vm756_vm4, %v739_v63  ;;  %v2088_v63 = vmov 5  }
  0xe9   : > { %v623_v9 = vmul.f32 0.0625, %v605_v6  ;;  %1966 = vset.pattern.permute.xlu1 %v2085_v3  ;;  %1965 = vset.pattern.permute.xlu0 %v2085_v3  ;;  %v685_v6 = vlaneseq }
  0xea   : > { %v621_v18 = vadd.f32 %v620_v8, %v619_v7  ;;  %v687_v8 = vstv %s1667_s17  ;;  %s2424_s17 = scalar_lea.sflag [#allocation7], %s408_s10 }
  0xeb   : > { %v627_v19 = vadd.f32 1e-05, %v623_v9  ;;  %v686_v7 = vand.u32 127, %v685_v6 }
  0xec   : > { %v625_v21 = vmul.f32 0.0625, %v621_v18 }
  0xed   : > { %1976 = vrsqrt.f32 %v627_v19  ;;  %v688_v18 = vadd.s32 %v687_v8, %v686_v7 }
  0xee   : > { %v629_v23 = vadd.f32 1e-05, %v625_v21 }
  0xef   : > { %vm689_vm6 = vcmp.ge.s32.totalorder %v688_v18, 2 }
  0xf0   : > { %v1973_v24 = vpop.eup %1972  ;;  %1978 = vrsqrt.f32 %v629_v23  ;;  %vm2337_vm7 = vmpackc.low %vm689_vm6, %vm689_vm6 }
  0xf1   : > { %v1975_v27 = vpop.eup %1974  ;;  %v640_v28 = vmul.f32 %v1973_v24, %v2277_v11  ;;  %v638_v29 = vmul.f32 %v1973_v24, %v2275_v10 }
  0xf2   : > { %v636_v30 = vmul.f32 %v1975_v27, %v2281_v17  ;;  %v634_v33 = vmul.f32 %v1975_v27, %v2279_v12 }
  0xf3   : > { %v658_v36 = vmul.f32 %v650_v20, %v640_v28  ;;  %v656_v37 = vmul.f32 %v645_v22, %v638_v29 }
  0xf4   : > { %v654_v38 = vmul.f32 %v650_v20, %v636_v30  ;;  %v652_v39 = vmul.f32 %v645_v22, %v634_v33 }
  0xf5   : > { %v672_v42 = vadd.f32 %v662_v34, %v656_v37  ;;  %v674_v43 = vadd.f32 %v666_v35, %v658_v36  ;;  %v696_v36 = vadd.s32 2, %v688_v18 }
  0xf6   : > { %v668_v45 = vadd.f32 %v662_v34, %v652_v39  ;;  %v670_v46 = vadd.f32 %v666_v35, %v654_v38 }
  0xf7   : > { %v1977_v44 = vpop.eup %1976  ;;  %v680_v10 = vmax.f32 %v672_v42, 0.0  ;;  %v682_v48 = vmax.f32 %v674_v43, 0.0  ;;  %vm697_vm9 = vcmp.lt.s32.totalorder %v696_v36, 320 }
  0xf8   : > { %v637_v47 = vmul.f32 %v1977_v44, %v2293_v32  ;;  %v635_v11 = vmul.f32 %v1977_v44, %v2291_v31  ;;  %v676_v17 = vmax.f32 %v668_v45, 0.0  ;;  %v678_v49 = vmax.f32 %v670_v46, 0.0  ;;  %v740_v44 = vld [vmem:[%s2480_s4 + $0x18] sm:$0xff]  ;;  %vm2358_vm10 = vmpackc.low %vm697_vm9, %vm697_vm9 }
  0xf9   : > { %v2317_v51 = vpack.c.bf16 %v682_v48, %v680_v10 }
  0xfa   : > { %v655_v12 = vmul.f32 %v650_v20, %v637_v47  ;;  %v653_v50 = vmul.f32 %v645_v22, %v635_v11  ;;  %v1979_v52 = vpop.eup %1978  ;;  %v2319_v53 = vpack.c.bf16 %v678_v49, %v676_v17 }
  0xfb   : > { %v641_v54 = vmul.f32 %v1979_v52, %v2301_v41  ;;  %v639_v55 = vmul.f32 %v1979_v52, %v2299_v40 }
  0xfc   : > { %v669_v56 = vadd.f32 %v662_v34, %v653_v50  ;;  %v671_v57 = vadd.f32 %v666_v35, %v655_v12 }
  0xfd   : > { %v659_v32 = vmul.f32 %v650_v20, %v641_v54  ;;  %v657_v58 = vmul.f32 %v645_v22, %v639_v55 }
  0xfe   : > { %v677_v31 = vmax.f32 %v669_v56, 0.0  ;;  %v679_v62 = vmax.f32 %v671_v57, 0.0 }
  0xff   : > { %v673_v59 = vadd.f32 %v662_v34, %v657_v58  ;;  %v675_v60 = vadd.f32 %v666_v35, %v659_v32 }
 0x100   : > { %v1925_v61 = vpack.i.bf16 %v677_v31, %v676_v17  ;;  %v1930_v41 = vpack.i.bf16 %v679_v62, %v678_v49  ;;  %v737_v49 = vld [vmem:[%s2480_s4] sm:$0xff] }
 0x101   : > { %v681_v0 = vmax.f32 %v673_v59, 0.0  ;;  %v683_v1 = vmax.f32 %v675_v60, 0.0  ;;  %v738_v59 = vld [vmem:[%s2480_s4 + $0x8] sm:$0xff]  ;;  %v1329_v62 = vld [vmem:[%s2481_s5] sm:$0xff] }
 0x102   : > { %1926 = vrot.lane.b32.xlu1 %v1925_v61, %s2083_s14 }
 0x103   : > { %v1935_v40 = vpack.i.bf16 %v681_v0, %v680_v10  ;;  %v1940_v2 = vpack.i.bf16 %v683_v1, %v682_v48 }
 0x105   : > { %1936 = vrot.lane.b32.xlu0 %v1935_v40, %s2083_s14 }
 0x106   : > { %1931 = vrot.lane.b32.xlu1 %v1930_v41, %s2083_s14 }
 0x109   : > { %1946 = vrot.lane.b32.xlu0 %v1925_v61, %s2084_s15  ;;  %v741_v61 = vld [vmem:[%s2480_s4 + $0x20] sm:$0xff] }
 0x10a   : > { %1941 = vrot.lane.b32.xlu1 %v1940_v2, %s2083_s14  ;;  %s1519_s14 = sshll.u32 %s458_s0, 4  ;;  %s2413_s14 = int_to_ptr.vmem [resolvable:$true] %s1519_s14 }
 0x10b   : > { %s1984_s20 = scalar_lea.vmem %s2413_s14, 512  ;;  %p1991_p4 = scmp.lt.s32.totalorder %s2413_s14, %s1989_s30 }
 0x10c   : > { %p1985_p1 = scmp.ne.s32.totalorder %s2413_s14, %s1984_s20  ;;  %p1992_p5 = scmp.lt.s32.totalorder %s1990_s9, %s1984_s20 }
 0x10d   : > { %1956 = vrot.lane.b32.xlu0 %v1935_v40, %s2084_s15 }
 0x10e   : > { %1951 = vrot.lane.b32.xlu1 %v1930_v41, %s2084_s15  ;;  %p1986_p2 = pnand %p1985_p1, %p2188_p8  ;;  %p1993_p6 = por %p1992_p5, %p1991_p4 }
 0x110   : > { %p1987_p3 = pneg %p1986_p2 }
 0x111   : > { %1242 = vperm.xlu0 %1965, %v2261_v26  }
 0x112   : > { %1961 = vrot.lane.b32.xlu1 %v1940_v2, %s2084_s15  ;;  %s1695_s15 = sshll.u32 %s1516_s19, 7  ;;  %p1994_p7 = pnand %p1993_p6, %p1987_p3 }
 0x113   : > { %s2419_s13 = scalar_lea.hbm %s2482_s6, %s1695_s15 }
 0x115   : > { %1968 = vset.pattern.permute.xlu0 %v2086_v4 }
 0x116   : > { %1246 = vperm.xlu1 %1966, %v2256_v25   ;;  %1306 = vperm.xlu0 %1968, %v2256_v25  }
 0x11a   : > { %1967 = vset.pattern.permute.xlu1 %v2086_v4  ;;  %1970 = vset.pattern.permute.xlu0 %v2088_v63 }
 0x11b   : > { %1302 = vperm.xlu1 %1967, %v2261_v26   ;;  %1332 = vperm.xlu0 %1970, %v2261_v26  }
 0x11f   : > { %1969 = vset.pattern.permute.xlu1 %v2087_v5 }
 0x120   : > { %1314 = vperm.xlu1 %1969, %v2261_v26  }
 0x124   : > { %1318 = vperm.xlu1 %1969, %v2256_v25  }
 0x128   : > { %1971 = vset.pattern.permute.xlu1 %v2088_v63 }
 0x129   : > { %1336 = vperm.xlu1 %1971, %v2256_v25  }
 0x174   : > { %v1927_v9 = vpop.permute.xlu1 %1926 }
 0x175   : > { %v1929_v19 = vunpack.i.h.bf16 %v1927_v9  ;;  %v1928_v20 = vunpack.i.l.bf16 %v1927_v9 }
 0x177   : > { %v1937_v22 = vpop.permute.xlu0 %1936  ;;  %v752_v29 = vsel %vm751_vm5, %v1928_v20, %v1929_v19 }
 0x178   : > { %v1932_v21 = vpop.permute.xlu1 %1931  ;;  %v1939_v27 = vunpack.i.h.bf16 %v1937_v22  ;;  %v1938_v28 = vunpack.i.l.bf16 %v1937_v22 }
 0x179   : > { %v1934_v23 = vunpack.i.h.bf16 %v1932_v21  ;;  %v1933_v24 = vunpack.i.l.bf16 %v1932_v21 }
 0x17a   : > { %v846_v45 = vsel %vm751_vm5, %v1938_v28, %v1939_v27 }
 0x17b   : > { %v753_v30 = vsel %vm751_vm5, %v1933_v24, %v1934_v23  ;;  %v1947_v34 = vpop.permute.xlu0 %1946 }
 0x17c   : > { %v1942_v33 = vpop.permute.xlu1 %1941  ;;  %v1786_v35 = vpack.c.bf16 %v753_v30, %v752_v29  ;;  %v1949_v42 = vunpack.i.h.bf16 %v1947_v34  ;;  %v1948_v43 = vunpack.i.l.bf16 %v1947_v34 }
 0x17d   : > { %v1944_v37 = vunpack.i.h.bf16 %v1942_v33  ;;  %v1943_v38 = vunpack.i.l.bf16 %v1942_v33 }
 0x17e   : > { %1787 = vmatprep.subr.bf16.mxu0 %v1786_v35  ;;  %v725_v12 = vsel %vm724_vm8, %v1948_v43, %v1949_v42 }
 0x17f   : > { %1789 = vmatpush3.bf16.msra.mxu0 %v1786_v35  ;;  %v847_v46 = vsel %vm751_vm5, %v1943_v38, %v1944_v37  ;;  %v1957_v11 = vpop.permute.xlu0 %1956 }
 0x180   : > { %v1952_v47 = vpop.permute.xlu1 %1951  ;;  %1796 = vmatprep.subr.msk.bf16.mxu0 %vm2337_vm7, %v2319_v53  ;;  %v1790_v10 = vpack.c.bf16 %v847_v46, %v846_v45  ;;  %v1959_v52 = vunpack.i.h.bf16 %v1957_v11  ;;  %v1958_v54 = vunpack.i.l.bf16 %v1957_v11 }
 0x181   : > { %v1954_v48 = vunpack.i.h.bf16 %v1952_v47  ;;  %v1953_v17 = vunpack.i.l.bf16 %v1952_v47 }
 0x182   : > { %1735 = vmatmul.mubr.msk.f32.vlgmr.msra.gmra.mrb[0].mxu0 %vm756_vm4, %v740_v44  ;;  %1791 = vmatprep.subr.bf16.mxu1 %v1790_v10 }
 0x183   : > { %v726_v50 = vsel %vm724_vm8, %v1953_v17, %v1954_v48  ;;  %1793 = vmatpush3.bf16.msra.mxu1 %v1790_v10  ;;  %1799 = vmatpush3.bf16.msk.msra.mxu0 %vm2337_vm7, %v2319_v53  ;;  %v727_v53 = vsel %vm724_vm8, %v1958_v54, %v1959_v52 }
 0x184   : > { %v1806_v56 = vpack.c.bf16 %v726_v50, %v725_v12  ;;  %v1962_v57 = vpop.permute.xlu1 %1961  ;;  %1802 = vmatprep.subr.msk.bf16.mxu1 %vm2337_vm7, %v2317_v51  ;;  %1748 = vmatprep.mubr.msk.f32.mxu0 %vm756_vm4, %v737_v49 }
 0x185   : > { %v1964_v32 = vunpack.i.h.bf16 %v1962_v57  ;;  %v1963_v58 = vunpack.i.l.bf16 %v1962_v57 }
 0x186   : > { %1742 = vmatmul.mubr.msk.f32.vlgmr.msra.gmra.mrb[0].mxu1 %vm756_vm4, %v740_v44  ;;  %1808 = vmatprep.subr.msk.bf16.mxu0 %vm2358_vm10, %v1806_v56 }
 0x187   : > { %v728_v31 = vsel %vm724_vm8, %v1963_v58, %v1964_v32  ;;  %1805 = vmatpush3.bf16.msk.msra.mxu1 %vm2337_vm7, %v2317_v51  ;;  %1755 = vmatprep.mubr.msk.f32.mxu1 %vm756_vm4, %v737_v49  ;;  %v742_v51 = vld [vmem:[%s2480_s4 + $0x28] sm:$0xff] }
 0x188   : > { %v1812_v60 = vpack.c.bf16 %v728_v31, %v727_v53 }
 0x18a   : > { %1749 = vmatmul.mubr.msk.f32.vlgmr.msra.gmra.mrb[0].mxu0 %vm756_vm4, %v738_v59  ;;  %1814 = vmatprep.subr.msk.bf16.mxu1 %vm2358_vm10, %v1812_v60 }
 0x18b   : > { %1811 = vmatpush3.bf16.msk.msra.mxu0 %vm2358_vm10, %v1806_v56  ;;  %1762 = vmatprep.mubr.msk.f32.mxu0 %vm756_vm4, %v741_v61 }
 0x18e   : > { %1756 = vmatmul.mubr.msk.f32.vlgmr.msra.gmra.mrb[0].mxu1 %vm756_vm4, %v738_v59 }
 0x18f   : > { %1817 = vmatpush3.bf16.msk.msra.mxu1 %vm2358_vm10, %v1812_v60  ;;  %1769 = vmatprep.mubr.msk.f32.mxu1 %vm756_vm4, %v741_v61 }
 0x190   : > { %v1243_v40 = vpop.permute.xlu0 %1242 }
 0x192   : > { %1763 = vmatmul.mubr.msk.f32.vlgmr.msra.gmra.mrb[0].mxu0 %vm756_vm4, %v742_v51 }
 0x193   : > { %1776 = vmatprep.mubr.msk.f32.mxu0 %vm756_vm4, %v1329_v62 }
 0x195   : > { %v1247_v0 = vpop.permute.xlu1 %1246  ;;  %v1307_v60 = vpop.permute.xlu0 %1306 }
 0x196   : > { %1770 = vmatmul.mubr.msk.f32.vlgmr.msra.gmra.mrb[0].mxu1 %vm756_vm4, %v742_v51 }
 0x197   : > { %1783 = vmatprep.mubr.msk.f32.mxu1 %vm756_vm4, %v1329_v62 }
 0x19a   : > { %v1303_v58 = vpop.permute.xlu1 %1302 }
 0x19f   : > { %v1315_v31 = vpop.permute.xlu1 %1314 }
 0x1a3   : > { %v1319_v62 = vpop.permute.xlu1 %1318 }
 0x265   : > { %v1764_v41 = vpop.f32.mrb[0].mxu0 }
 0x266   : > { %v1250_v1 = vadd.f32 %v1764_v41, %v1247_v0  ;;  %v1153_v2 = vpop.f32.mrb[1].mxu0 }
 0x267   : > { %v1249_v3 = vadd.f32 %v1243_v40, %v1153_v2 }
 0x269   : > { %v1253_v4 = vadd.f32 %v1250_v1, %v1249_v3  ;;  %v1771_v5 = vpop.f32.mrb[0].mxu1 }
 0x26a   : > { %v1252_v6 = vadd.f32 %v1771_v5, %v1247_v0  ;;  %v1228_v7 = vpop.f32.mrb[1].mxu1 }
 0x26b   : > { %v1254_v8 = vrot.slane %v1253_v4, 4  ;;  %v1251_v9 = vadd.f32 %v1243_v40, %v1228_v7 }
 0x26d   : > { %v1255_v18 = vadd.f32 %v1254_v8, %v1253_v4  ;;  %v1260_v19 = vadd.f32 %v1252_v6, %v1251_v9 }
 0x26f   : > { %v1256_v20 = vrot.slane %v1255_v18, 2  ;;  %v1261_v21 = vrot.slane %v1260_v19, 4 }
 0x271   : > { %v1257_v22 = vadd.f32 %v1256_v20, %v1255_v18  ;;  %v1262_v26 = vadd.f32 %v1261_v21, %v1260_v19  ;;  %v1330_v21 = vld [vmem:[%s2481_s5 + $0x8] sm:$0xff] }
 0x273   : > { %v1258_v23 = vrot.slane %v1257_v22, 1  ;;  %v1263_v25 = vrot.slane %v1262_v26, 2 }
 0x275   : > { %v1259_v24 = vadd.f32 %v1258_v23, %v1257_v22  ;;  %v1264_v27 = vadd.f32 %v1263_v25, %v1262_v26  ;;  %v1337_v26 = vpop.permute.xlu1 %1336  ;;  %v1333_v23 = vpop.permute.xlu0 %1332 }
 0x277   : > { %v1267_v28 = vmul.f32 0.0625, %v1259_v24  ;;  %v1265_v29 = vrot.slane %v1264_v27, 1 }
 0x279   : > { %v1269_v30 = vsub.f32 %v1249_v3, %v1267_v28  ;;  %v1270_v33 = vsub.f32 %v1250_v1, %v1267_v28  ;;  %v1266_v34 = vadd.f32 %v1265_v29, %v1264_v27 }
 0x27b   : > { %v1273_v35 = vmul.f32 %v1269_v30, %v1269_v30  ;;  %v1274_v36 = vmul.f32 %v1270_v33, %v1270_v33  ;;  %v1268_v37 = vmul.f32 0.0625, %v1266_v34 }
 0x27d   : > { %v1277_v38 = vadd.f32 %v1274_v36, %v1273_v35  ;;  %v1271_v39 = vsub.f32 %v1251_v9, %v1268_v37  ;;  %v1272_v42 = vsub.f32 %v1252_v6, %v1268_v37 }
 0x27f   : > { %v1278_v43 = vrot.slane %v1277_v38, 4  ;;  %v1275_v44 = vmul.f32 %v1271_v39, %v1271_v39  ;;  %v1276_v45 = vmul.f32 %v1272_v42, %v1272_v42 }
 0x281   : > { %v1279_v46 = vadd.f32 %v1278_v43, %v1277_v38  ;;  %v1284_v47 = vadd.f32 %v1276_v45, %v1275_v44 }
 0x283   : > { %v1280_v11 = vrot.slane %v1279_v46, 2  ;;  %v1285_v10 = vrot.slane %v1284_v47, 4 }
 0x285   : > { %v1281_v48 = vadd.f32 %v1280_v11, %v1279_v46  ;;  %v1286_v17 = vadd.f32 %v1285_v10, %v1284_v47 }
 0x287   : > { %v1282_v49 = vrot.slane %v1281_v48, 1  ;;  %v1287_v12 = vrot.slane %v1286_v17, 2 }
 0x289   : > { %v1283_v50 = vadd.f32 %v1282_v49, %v1281_v48  ;;  %v1288_v52 = vadd.f32 %v1287_v12, %v1286_v17 }
 0x28b   : > { %v1291_v54 = vmul.f32 0.0625, %v1283_v50  ;;  %v1289_v55 = vrot.slane %v1288_v52, 1 }
 0x28d   : > { %v1293_v56 = vadd.f32 1e-05, %v1291_v54  ;;  %v1290_v57 = vadd.f32 %v1289_v55, %v1288_v52 }
 0x28f   : > { %1980 = vrsqrt.f32 %v1293_v56  ;;  %v1292_v32 = vmul.f32 0.0625, %v1290_v57 }
 0x291   : > { %v1294_v53 = vadd.f32 1e-05, %v1292_v32 }
 0x293   : > { %1982 = vrsqrt.f32 %v1294_v53 }
 0x299   : > { %v1981_v59 = vpop.eup %1980 }
 0x29a   : > { %v1297_v61 = vmul.f32 %v1981_v59, %v1269_v30  ;;  %v1298_v51 = vmul.f32 %v1981_v59, %v1270_v33 }
 0x29c   : > { %v1309_v63 = vmul.f32 %v1303_v58, %v1297_v61  ;;  %v1310_v0 = vmul.f32 %v1307_v60, %v1298_v51 }
 0x29d   : > { %v1983_v40 = vpop.eup %1982 }
 0x29e   : > { %v1299_v41 = vmul.f32 %v1983_v40, %v1271_v39  ;;  %v1321_v1 = vadd.f32 %v1315_v31, %v1309_v63  ;;  %v1300_v2 = vmul.f32 %v1983_v40, %v1272_v42  ;;  %v1322_v3 = vadd.f32 %v1319_v62, %v1310_v0 }
 0x2a0   : > { %v1311_v4 = vmul.f32 %v1303_v58, %v1299_v41  ;;  %v1325_v5 = vmax.f32 %v1321_v1, 0.0  ;;  %v1312_v6 = vmul.f32 %v1307_v60, %v1300_v2  ;;  %v1326_v7 = vmax.f32 %v1322_v3, 0.0 }
 0x2a2   : > { %v1323_v8 = vadd.f32 %v1315_v31, %v1311_v4  ;;  %v1324_v9 = vadd.f32 %v1319_v62, %v1312_v6  ;;  %v1818_v18 = vpack.c.bf16 %v1326_v7, %v1325_v5 }
 0x2a4   : > { %v1327_v19 = vmax.f32 %v1323_v8, 0.0  ;;  %v1328_v20 = vmax.f32 %v1324_v9, 0.0  ;;  %1819 = vmatprep.subr.bf16.mxu0 %v1818_v18 }
 0x2a5   : > { %1821 = vmatpush3.bf16.msra.mxu0 %v1818_v18 }
 0x2a6   : > { %v1822_v22 = vpack.c.bf16 %v1328_v20, %v1327_v19 }
 0x2a8   : > { %1823 = vmatprep.subr.bf16.mxu1 %v1822_v22  ;;  %1777 = vmatmul.mubr.msk.f32.vlgmr.msra.gmra.mrb[2].mxu0 %vm756_vm4, %v1330_v21 }
 0x2a9   : > { %1825 = vmatpush3.bf16.msra.mxu1 %v1822_v22 }
 0x2ac   : > { %1784 = vmatmul.mubr.msk.f32.vlgmr.msra.gmra.mrb[2].mxu1 %vm756_vm4, %v1330_v21 }
 0x37b   : > { %v1778_v25 = vpop.f32.mrb[2].mxu0 }
 0x37c   : > { %v1417_v24 = vadd.f32 %v1778_v25, %v1337_v26  ;;  %v1411_v27 = vpop.f32.mrb[3].mxu0 }
 0x37d   : > { %v1412_v28 = vadd.f32 %v1411_v27, %v1333_v23 }
 0x37e   : > { %v1496_v29 = vadd.f32 %v1417_v24, %v2243_v16 }
 0x37f   : > { %v1785_v30 = vpop.f32.mrb[2].mxu1  ;;  %v1495_v33 = vadd.f32 %v1412_v28, %v2237_v14 }
 0x380   : > { %v1492_v34 = vadd.f32 %v1785_v30, %v1337_v26  ;;  %1500 = vst [vmem:[%s458_s0 + $0x8] sm:$0xff] %v1496_v29  ;;  %v1486_v35 = vpop.f32.mrb[3].mxu1 }
 0x381   : > { %1499 = vst [vmem:[%s458_s0] sm:$0xff] %v1495_v33  ;;  %v1487_v36 = vadd.f32 %v1486_v35, %v1333_v23 }
 0x382   : > { %v1498_v37 = vadd.f32 %v1492_v34, %v2241_v15 }
 0x383   : > { %v1497_v14 = vadd.f32 %v1487_v36, %v2235_v13 }
 0x384   : > { %1502 = vst [vmem:[%s458_s0 + $0x18] sm:$0xff] %v1498_v37 }
 0x385   : > { %1501 = vst [vmem:[%s458_s0 + $0x10] sm:$0xff] %v1497_v14 }
 0x386   : > { %1997 = shalt.err (!%p1994_p7)
}
 0x387   : > { %s1998_s10 = scalar_lea.hbm %s2419_s13, 512  ;;  %s2002_s0 = scalar_lea.hbm %s2482_s6, 3072 }
 0x388   : > { %p1999_p10 = scmp.ne.s32.totalorder %s2419_s13, %s1998_s10  ;;  %p2003_p13 = scmp.lt.u32.totalorder %s2419_s13, %s2482_s6 }
 0x389   : > { %p2004_p0 = scmp.lt.u32.totalorder %s2002_s0, %s1998_s10  ;;  %p2006_p2 = scmp.lt.u32.totalorder %s1998_s10, %s2419_s13 }
 0x38a   : > { %p2000_p11 = pnand %p1999_p10, %p2188_p8 }
 0x38b   : > { %p2005_p1 = por %p2004_p0, %p2003_p13 }
 0x38c   : > { %p2001_p12 = pneg %p2000_p11 }
 0x38d   : > { %p2007_p3 = por %p2006_p2, %p2005_p1 }
 0x38f   : > { %p2008_p4 = pnand %p2007_p3, %p2001_p12 }
 0x391   : > { %2011 = shalt.err (!%p2008_p4)
}
 0x392   : > { %s2090_s25 = smov 128   ;;  %s2091_s20 = smov 384  }
 0x393   : > { %s2092_s29 = smov 8  }
 0x394   : > { %1838 = dma.vmem_to_hbm [thread:$0]  (%p2188_p8), %s2413_s14, 512, %s2419_s13, %s2424_s17, %s2090_s25, %s2091_s20, %s2092_s29  }
 0x395 PF: > { %p1844_p5 = scmp.ge.s32.totalorder %s2078_s28, 2  ;;  %s1534_s30 = sand.u32 1, %s2050_s21  }
 0x396   : > { %s1535_s9 = scalar_lea.sflag [#allocation7], %s1534_s30 }
 0x397   : > { %p1841_p6 = pnand %p1844_p5, %p2192_p9 }
 0x399   : > { %2045 = dma.done.wait (!%p1841_p6), %s1535_s9, 512  }
 0x39a   : > { %2047 = vsyncadd (!%p1841_p6), %s1535_s9, 4294966784  ;;  %s19_s28 = sadd.s32 1, %s2078_s28   ;;  %s2492_s21 = smov %s2054_s22 }
 0x39b   : > { %p16_p7 = scmp.ge.s32.totalorder %s19_s28, 8   ;;  %s2493_s22 = smov %s2058_s23 }
 0x39c   : > { %s2494_s23 = smov %s2200_s16  ;;  %s2495_s24 = smov %s2070_s26 }
 0x39d   : > { %s2496_s25 = smov %s2074_s27  ;;  %s2497_s26 = smov %s2500_s7 }
 0x39e   : > { %s2498_s27 = smov %s2504_s8  ;;  %18 = sbr.rel (!%p16_p7) target bundleno = 7 (0x7), region = 214 }
 0x3a5   :  { %1540 = vsyncpa [#allocation7], 1 }
 0x3a6   :  { %1542 = vsyncpa [#allocation7 + $0x1], 1 }

</bundles_post_ra>
